<compile_context>
chip_gen: v7x
topology: tpu7x:2x2x1
jax: 0.10.0
libtpu: 0.0.40
codegen_flags: <defaults>
</compile_context>

<pallas_src>
import functools

import jax
import jax.numpy as jnp
from jax import lax
from jax.experimental import pallas as pl
from jax.experimental.pallas import tpu as pltpu


def _round_up(x: int, m: int) -> int:
    return ((x + m - 1) // m) * m


def _triplet_loss_kernel(pos_ref, neg_ref, out_ref, acc_ref, *,
                         tile_r, tiles_per_split, total_rows, inv_count,
                         need_mask, group_rows):
    s = pl.program_id(0)   # split axis (CORE_PARALLEL on v7x, size 1 elsewhere)
    i = pl.program_id(1)   # reduction axis ("arbitrary")

    @pl.when(i == 0)
    def _():
        acc_ref[...] = jnp.zeros_like(acc_ref)

    # Upcast AFTER the VMEM load so HBM traffic stays in the native dtype.
    pos = pos_ref[...].astype(jnp.float32)
    neg = neg_ref[...].astype(jnp.float32)
    diff = pos - neg
    # Exactly mirrors torch.log(1 + torch.exp(-x)) (no log1p/softplus
    # stabilization, to preserve the module's forward semantics).
    # TODO(synk): on v7x, if a bundle dump shows the EUP slot binding at
    # 3.2 TB/s HBM, move exp/log to the bf16 EUP path (keep f32 accumulation).
    loss = jnp.log(1.0 + jnp.exp(-diff))

    if need_mask:
        # Mask by LOGICAL row index; the partial/over-covered trailing blocks
        # carry unspecified tail rows which are zeroed here (jnp.where does not
        # propagate NaN/Inf from the unselected operand).
        row0 = (s * tiles_per_split + i) * tile_r
        row_idx = row0 + lax.broadcasted_iota(jnp.int32, loss.shape, 0)
        loss = jnp.where(row_idx < total_rows, loss, 0.0)

    lane = loss.shape[1]
    if group_rows:
        # (tile_r, lane) -> (tile_r//8, 8, lane); summing axis 0 is a chain of
        # vreg-wise adds (pure VALU, no XLU), so the accumulator stays a fixed
        # (8, lane) footprint no matter how large the streaming tile is.
        acc_ref[...] += jnp.sum(loss.reshape(tile_r // 8, 8, lane), axis=0)
    else:
        # Tiny-input fallback (rows < 8, single tile).
        acc_ref[...] += jnp.sum(loss, axis=0, keepdims=True)

    # Single cross-lane/sublane reduce + scale, once per split.
    @pl.when(i == pl.num_programs(1) - 1)
    def _():
        partial = jnp.sum(acc_ref[...]) * inv_count
        out_ref[...] = jnp.broadcast_to(partial, out_ref.shape)


def triplet_loss(pos_score: jax.Array, retrieve_score: jax.Array, margin: float = 1.0) -> jax.Array:
    """Pallas implementation of TripletLoss.forward. Returns a scalar float32."""
    assert pos_score.shape == retrieve_score.shape, "score shapes must match"
    # `margin` is unused in the forward pass (mirrors the PyTorch module).
    n_elems = int(pos_score.size)
    assert n_elems > 0, "empty input"

    # ---- layout: present the element stream lane-dense when it is free ----
    if n_elems % 128 == 0:
        lane = 128
        pos2d = pos_score.reshape(-1, 128)       # row-major reshape: free bitcast
        neg2d = retrieve_score.reshape(-1, 128)
    else:
        lane = pos_score.shape[-1] if pos_score.ndim >= 1 else 1
        pos2d = pos_score.reshape(-1, lane)
        neg2d = retrieve_score.reshape(-1, lane)
        # TODO(synk): when n_elems % 128 != 0 a fully lane-dense repack would
        # need a padding copy (~2x HBM traffic); keep the native trailing dim
        # as the (full-extent) lane axis instead.
    rows = pos2d.shape[0]
    itemsize = pos2d.dtype.itemsize

    # ---- hardware-dependent budgets (v7x: 64 MiB VMEM/TC, 2 TCs/chip) ----
    try:
        vmem_cap = int(pltpu.get_tpu_info().vmem_capacity_bytes)
    except Exception:
        vmem_cap = None
    if vmem_cap is not None and vmem_cap > 96 * 1024 * 1024:
        # v5e / v6e: 128 MiB physical VMEM, single TensorCore.
        vmem_budget = 64 * 1024 * 1024
        two_cores = False
    else:
        # v7x (or unknown chip -> stay conservative).
        vmem_budget = 40 * 1024 * 1024
        two_cores = vmem_cap is not None

    nsplit = 2 if (two_cores and rows >= 64) else 1

    # ---- tile sizing: big streaming blocks are the main perf lever ----
    rows_per_split = -(-rows // nsplit)
    target_elems = 1 << 20                       # ~1M elems: 4 MiB f32 / 2 MiB bf16 per block
    # 2 inputs x 2 pipeline buffers per block, leave ~1 MiB headroom for acc/out.
    max_block_bytes = max(vmem_budget - (1 << 20), 1 << 20) // 4
    blk_elems = max(8 * lane, min(target_elems, max_block_bytes // itemsize))
    tile_r_cap = max(8, ((blk_elems // lane) // 8) * 8)

    if rows >= 8:
        max_tile_rows = (rows // 8) * 8          # block rows <= array rows, multiple of 8
        tile_r = max(8, min(tile_r_cap, _round_up(rows_per_split, 8), max_tile_rows))
        tile_r = (tile_r // 8) * 8
        group_rows = True
    else:
        tile_r = rows                            # full-extent block (legal for any size)
        group_rows = False

    tiles_per_split = -(-rows_per_split // tile_r)
    coverage = nsplit * tiles_per_split * tile_r
    need_mask = coverage != rows
    last_block = -(-rows // tile_r) - 1          # last block index that starts in-bounds
    inv_count = 1.0 / float(n_elems)

    def idx_map(s, i):
        blk = s * tiles_per_split + i
        if nsplit > 1:
            # Guard split-1 blocks that over-cover past the end of the array:
            # the DMA reloads the last valid block and the row mask zeroes it.
            blk = jnp.minimum(blk, last_block)
        return (blk, 0)

    kernel = functools.partial(
        _triplet_loss_kernel,
        tile_r=tile_r,
        tiles_per_split=tiles_per_split,
        total_rows=rows,
        inv_count=inv_count,
        need_mask=need_mask,
        group_rows=group_rows,
    )

    if nsplit > 1:
        dim_sem = (getattr(pltpu, "CORE_PARALLEL", "parallel"),
                   getattr(pltpu, "ARBITRARY", "arbitrary"))
    else:
        dim_sem = ("arbitrary", "arbitrary")

    acc_rows = 8 if group_rows else 1

    out = pl.pallas_call(
        kernel,
        out_shape=jax.ShapeDtypeStruct((nsplit * 8, 128), jnp.float32),
        grid=(nsplit, tiles_per_split),
        in_specs=[
            # TODO(synk): if a bundle dump still shows exposed DMA on short
            # grids, add pipeline_mode=pl.Buffered(3) here (VMEM permitting).
            pl.BlockSpec((tile_r, lane), idx_map),
            pl.BlockSpec((tile_r, lane), idx_map),
        ],
        out_specs=pl.BlockSpec((8, 128), lambda s, i: (s, 0)),
        scratch_shapes=[pltpu.VMEM((acc_rows, lane), jnp.float32)],
        compiler_params=pltpu.CompilerParams(
            dimension_semantics=dim_sem,
            vmem_limit_bytes=vmem_budget,
        ),
    )(pos2d, neg2d)

    # Each split's (8,128) block is a splat of its (already 1/N-scaled)
    # partial; pick one lane per split and sum.
    partials = out.reshape(nsplit, 8, 128)[:, 0, 0]
    return jnp.sum(partials)


if __name__ == "__main__":
    key = jax.random.PRNGKey(0)
    k1, k2, k3, k4, k5, k6 = jax.random.split(key, 6)

    def ref_loss(p, n):
        return jnp.mean(jnp.log(1.0 + jnp.exp(-(p - n))))

    # Test 1: lane-aligned shape (batch=8, 128 candidate scores), f32.
    p1 = jax.random.normal(k1, (8, 128), dtype=jnp.float32)
    n1 = jax.random.normal(k2, (8, 128), dtype=jnp.float32)
    l1 = jax.block_until_ready(triplet_loss(p1, n1, margin=1.0))
    assert jnp.allclose(l1, ref_loss(p1, n1), rtol=1e-5, atol=1e-6), (l1, ref_loss(p1, n1))

    # Test 2: ragged rows + non-multiple-of-128 lane dim — exercises the
    # partial trailing block + in-kernel row mask (no wrapper-side padding).
    p2 = jax.random.normal(k3, (37, 100), dtype=jnp.float32)
    n2 = jax.random.normal(k4, (37, 100), dtype=jnp.float32)
    l2 = jax.block_until_ready(triplet_loss(p2, n2, margin=1.0))
    assert jnp.allclose(l2, ref_loss(p2, n2), rtol=1e-5, atol=1e-6), (l2, ref_loss(p2, n2))

    # Test 3: narrow trailing dim repacked lane-dense via a free reshape.
    p3 = jax.random.normal(k5, (16, 64), dtype=jnp.float32)
    n3 = jax.random.normal(k6, (16, 64), dtype=jnp.float32)
    l3 = jax.block_until_ready(triplet_loss(p3, n3, margin=1.0))
    assert jnp.allclose(l3, ref_loss(p3, n3), rtol=1e-5, atol=1e-6), (l3, ref_loss(p3, n3))

    print("KERNEL_OK")
</pallas_src>

<mosaic_0001>
module attributes {stable_mosaic.version = 11 : i64} {
  func.func @_triplet_loss_kernel(%arg0: i32, %arg1: i32, %arg2: memref<8x128xf32, #tpu.memory_space<vmem>>, %arg3: memref<8x128xf32, #tpu.memory_space<vmem>>, %arg4: memref<8x128xf32, #tpu.memory_space<vmem>>, %arg5: memref<8x128xf32, #tpu.memory_space<vmem>>) attributes {dimension_semantics = [#tpu.dimension_semantics<arbitrary>, #tpu.dimension_semantics<arbitrary>], iteration_bounds = array<i64: 1, 1>, scalar_prefetch = 0 : i64, scratch_operands = 1 : i64, tpu.core_type = #tpu.core_type<tc>, window_params = [{transform_indices = @transform_0, window_bounds = array<i64: 8, 128>}, {transform_indices = @transform_1, window_bounds = array<i64: 8, 128>}, {transform_indices = @transform_2, window_bounds = array<i64: 8, 128>}]} {
    %c0_i32 = arith.constant 0 : i32
    %0 = arith.cmpi eq, %arg1, %c0_i32 : i32
    %1 = arith.extui %0 : i1 to i32
    %c0_i32_0 = arith.constant 0 : i32
    %2 = arith.cmpi ne, %1, %c0_i32_0 : i32
    scf.if %2 {
      %cst_12 = arith.constant 0.000000e+00 : f32
      %20 = vector.broadcast %cst_12 : f32 to vector<8x128xf32>
      %c0_13 = arith.constant 0 : index
      %c0_14 = arith.constant 0 : index
      %21 = vector.load %arg5[%c0_13, %c0_14] : memref<8x128xf32, #tpu.memory_space<vmem>>, vector<8x128xf32>
      tpu.vector_store %arg5[%c0_13, %c0_14], %20 {strides = array<i32>} : memref<8x128xf32, #tpu.memory_space<vmem>>, vector<8x128xf32>,
    } else {
    }
    %c0 = arith.constant 0 : index
    %c0_1 = arith.constant 0 : index
    %3 = vector.load %arg2[%c0, %c0_1] : memref<8x128xf32, #tpu.memory_space<vmem>>, vector<8x128xf32>
    %c0_2 = arith.constant 0 : index
    %c0_3 = arith.constant 0 : index
    %4 = vector.load %arg3[%c0_2, %c0_3] : memref<8x128xf32, #tpu.memory_space<vmem>>, vector<8x128xf32>
    %5 = arith.subf %3, %4 : vector<8x128xf32>
    %cst = arith.constant 0.000000e+00 : f32
    %6 = vector.broadcast %cst : f32 to vector<8x128xf32>
    %7 = arith.subf %6, %5 : vector<8x128xf32>
    %8 = math.exp %7 : vector<8x128xf32>
    %cst_4 = arith.constant 1.000000e+00 : f32
    %9 = vector.broadcast %cst_4 : f32 to vector<8x128xf32>
    %10 = arith.addf %9, %8 : vector<8x128xf32>
    %11 = math.log %10 : vector<8x128xf32>
    %c0_5 = arith.constant 0 : index
    %c0_6 = arith.constant 0 : index
    %12 = vector.load %arg5[%c0_5, %c0_6] : memref<8x128xf32, #tpu.memory_space<vmem>>, vector<8x128xf32>
    %13 = vector.shape_cast %11 : vector<8x128xf32> to vector<1x8x128xf32>
    %cst_7 = arith.constant dense<0.000000e+00> : vector<8x128xf32>
    %14 = vector.multi_reduction <add>, %13, %cst_7 [0] : vector<1x8x128xf32> to vector<8x128xf32>
    %15 = arith.addf %12, %14 : vector<8x128xf32>
    %c0_8 = arith.constant 0 : index
    %c0_9 = arith.constant 0 : index
    %16 = vector.load %arg5[%c0_8, %c0_9] : memref<8x128xf32, #tpu.memory_space<vmem>>, vector<8x128xf32>
    tpu.vector_store %arg5[%c0_8, %c0_9], %15 {strides = array<i32>} : memref<8x128xf32, #tpu.memory_space<vmem>>, vector<8x128xf32>,
    %c0_i32_10 = arith.constant 0 : i32
    %17 = arith.cmpi eq, %arg1, %c0_i32_10 : i32
    %18 = arith.extui %17 : i1 to i32
    %c0_i32_11 = arith.constant 0 : i32
    %19 = arith.cmpi ne, %18, %c0_i32_11 : i32
    scf.if %19 {
      %c0_12 = arith.constant 0 : index
      %c0_13 = arith.constant 0 : index
      %20 = vector.load %arg5[%c0_12, %c0_13] : memref<8x128xf32, #tpu.memory_space<vmem>>, vector<8x128xf32>
      %21 = vector.shape_cast %20 : vector<8x128xf32> to vector<1x8x128xf32>
      %cst_14 = arith.constant dense<0.000000e+00> : vector<1xf32>
      %22 = vector.multi_reduction <add>, %21, %cst_14 [1, 2] : vector<1x8x128xf32> to vector<1xf32>
      %23 = vector.shape_cast %22 : vector<1xf32> to vector<1x1x1xf32>
      %24 = vector.extract %23[0, 0, 0] : f32 from vector<1x1x1xf32>
      %cst_15 = arith.constant 9.765625E-4 : f32
      %25 = arith.mulf %24, %cst_15 : f32
      %26 = vector.broadcast %25 : f32 to vector<8x128xf32>
      %c0_16 = arith.constant 0 : index
      %c0_17 = arith.constant 0 : index
      %27 = vector.load %arg4[%c0_16, %c0_17] : memref<8x128xf32, #tpu.memory_space<vmem>>, vector<8x128xf32>
      tpu.vector_store %arg4[%c0_16, %c0_17], %26 {strides = array<i32>} : memref<8x128xf32, #tpu.memory_space<vmem>>, vector<8x128xf32>,
    } else {
    }
    return
  }
  func.func @transform_0(%arg0: i32, %arg1: i32) -> (i32, i32) {
    %c1_i32 = arith.constant 1 : i32
    %0 = arith.muli %arg0, %c1_i32 : i32
    %1 = arith.addi %0, %arg1 : i32
    %c0_i32 = arith.constant 0 : i32
    %c0_i32_0 = arith.constant 0 : i32
    return %1, %c0_i32 : i32, i32
  }
  func.func @transform_1(%arg0: i32, %arg1: i32) -> (i32, i32) {
    %c1_i32 = arith.constant 1 : i32
    %0 = arith.muli %arg0, %c1_i32 : i32
    %1 = arith.addi %0, %arg1 : i32
    %c0_i32 = arith.constant 0 : i32
    %c0_i32_0 = arith.constant 0 : i32
    return %1, %c0_i32 : i32, i32
  }
  func.func @transform_2(%arg0: i32, %arg1: i32) -> (i32, i32) {
    %c0_i32 = arith.constant 0 : i32
    %c0_i32_0 = arith.constant 0 : i32
    return %arg0, %c0_i32 : i32, i32
  }
}

</mosaic_0001>

<bundles_post_ra>
// kernel: tpu_custom_call.1
= control target key start
LH: loop header
LB: loop body
LE: loop exit
PB: predicated region body
PF: predicated region fallthrough
CT: control target
= control target key end

     0   :  { %7 = vsyncpa [#allocation4], 0  ;;  %s229_s0 = inlined_call_operand.hbm [shape: f32[8,128], index: 0, kind: input, shape index: {}]   ;;  %s230_s1 = inlined_call_operand.hbm [shape: f32[8,128], index: 1, kind: input, shape index: {}]   ;;  %s231_s2 = inlined_call_operand.hbm [shape: f32[8,128], index: 2, kind: output, shape index: {}]  }
   0x1   :  { %8 = vsyncpa [#allocation7], 0 }
   0x2   :  { %9 = vsyncpa [#allocation5], 0  ;;  %s175_s9 = smov [#allocation3]   ;;  %s176_s11 = smov [#allocation6]  }
   0x3   :  { %s19_s10 = sshll.u32 %s175_s9, 4  ;;  %s32_s12 = sshll.u32 %s176_s11, 4  ;;  %s20_s10 = int_to_ptr.vmem [resolvable:$true] %s19_s10  ;;  %s33_s12 = int_to_ptr.vmem [resolvable:$true] %s32_s12 }
   0x4   :  { %s103_s15 = scalar_lea.hbm %s229_s0, 128 }
   0x5   :  { %p104_p0 = scmp.ne.s32.totalorder %s229_s0, %s103_s15  ;;  %p107_p1 = scmp.lt.u32.totalorder %s103_s15, %s229_s0 }
   0x7   :  { %p109_p2 = pnand %p107_p1, %p104_p0 }
   0x9   :  { %112 = shalt.err (!%p109_p2)
}
   0xa   :  { %s113_s20 = scalar_lea.vmem %s20_s10, 128  ;;  %p118_p4 = scmp.lt.s32.totalorder %s20_s10, %s20_s10 }
   0xb   :  { %p114_p3 = scmp.ne.s32.totalorder %s20_s10, %s113_s20  ;;  %p119_p5 = scmp.lt.s32.totalorder %s113_s20, %s113_s20 }
   0xd   :  { %p120_p6 = por %p119_p5, %p118_p4 }
   0xf   :  { %p121_p7 = pnand %p120_p6, %p114_p3 }
  0x11   :  { %124 = shalt.err (!%p121_p7)
}
  0x12   :  { %22 = dma.hbm_to_vmem [thread:$0]  %s229_s0, 128, %s20_s10, [#allocation4]  }
  0x13   :  { %s125_s25 = scalar_lea.hbm %s230_s1, 128 }
  0x14   :  { %p126_p8 = scmp.ne.s32.totalorder %s230_s1, %s125_s25  ;;  %p129_p9 = scmp.lt.u32.totalorder %s125_s25, %s230_s1 }
  0x16   :  { %p131_p10 = pnand %p129_p9, %p126_p8 }
  0x18   :  { %134 = shalt.err (!%p131_p10)
}
  0x19   :  { %s135_s30 = scalar_lea.vmem %s33_s12, 128  ;;  %p140_p12 = scmp.lt.s32.totalorder %s33_s12, %s33_s12 }
  0x1a   :  { %p136_p11 = scmp.ne.s32.totalorder %s33_s12, %s135_s30  ;;  %p141_p13 = scmp.lt.s32.totalorder %s135_s30, %s135_s30 }
  0x1c   :  { %p142_p0 = por %p141_p13, %p140_p12 }
  0x1e   :  { %p143_p1 = pnand %p142_p0, %p136_p11 }
  0x20   :  { %146 = shalt.err (!%p143_p1)
}
  0x21   :  { %35 = dma.hbm_to_vmem [thread:$0]  %s230_s1, 128, %s33_s12, [#allocation7]  }
  0x22   :  { %169 = dma.done.wait [#allocation4], 128  }
  0x23   :  { %170 = vsyncadd [#allocation4], 4294967168 }
  0x24   :  { %171 = dma.done.wait [#allocation7], 128  }
  0x25   :  { %172 = vsyncadd [#allocation7], 4294967168  ;;  %v49_v0 = vld [vmem:[#allocation3] sm:$0xff]  ;;  %v50_v1 = vld [vmem:[#allocation6] sm:$0xff]  ;;  %s177_s1 = smov [#allocation8]  }
  0x26   :  { %v51_v2 = vsub.f32 %v49_v0, %v50_v1  ;;  %s84_s4 = sshll.u32 %s177_s1, 4  ;;  %s85_s4 = int_to_ptr.vmem [resolvable:$true] %s84_s4 }
  0x27   :  { %s147_s7 = scalar_lea.vmem %s85_s4, 128  ;;  %p152_p3 = scmp.lt.s32.totalorder %s85_s4, %s85_s4 }
  0x28   :  { %v52_v3 = vsub.f32 0.0, %v51_v2  ;;  %p148_p2 = scmp.ne.s32.totalorder %s85_s4, %s147_s7  ;;  %p153_p4 = scmp.lt.s32.totalorder %s147_s7, %s147_s7 }
  0x2a   :  { %v53_v4 = vmul.f32 1.442695, %v52_v3  ;;  %p154_p5 = por %p153_p4, %p152_p3 }
  0x2c   :  { %99 = vpow2.f32 %v53_v4  ;;  %p155_p6 = pnand %p154_p5, %p148_p2 }
  0x36   :  { %v100_v5 = vpop.eup %99 }
  0x37   :  { %v55_v6 = vadd.f32 1.0, %v100_v5 }
  0x39   :  { %101 = vlog2.f32 %v55_v6 }
  0x43   :  { %v102_v7 = vpop.eup %101 }
  0x44   :  { %v57_v8 = vmul.f32 0.6931472, %v102_v7 }
  0x46   :  { %66 = vadd.xlane.f32.xlu0 %v57_v8 }
  0xd3   :  { %v67_v9 = vpop.xlane.xlu0 %66 }
  0xd4   :  { %v68_v10 = vrot.slane %v67_v9, 4 }
  0xd6   :  { %v69_v11 = vadd.f32 %v68_v10, %v67_v9 }
  0xd8   :  { %v70_v12 = vrot.slane %v69_v11, 2 }
  0xda   :  { %v71_v13 = vadd.f32 %v70_v12, %v69_v11 }
  0xdc   :  { %v72_v14 = vrot.slane %v71_v13, 1 }
  0xde   :  { %v73_v15 = vadd.f32 %v72_v14, %v71_v13 }
  0xe0   :  { %94 = vpush %v73_v15 }
 0x111   :  { %s95_s5 = spop %94 }
 0x112   :  { %s75_s6 = smul.f32 0.0009765625, %s95_s5 }
 0x114   :  { %v76_v16 = vstv %s75_s6 }
 0x115   :  { %77 = vst [vmem:[#allocation8] sm:$0xff] %v76_v16 }
 0x116   :  { %158 = shalt.err (!%p155_p6)
}
 0x117   :  { %s159_s10 = scalar_lea.hbm %s231_s2, 128 }
 0x118   :  { %p160_p7 = scmp.ne.s32.totalorder %s231_s2, %s159_s10  ;;  %p163_p8 = scmp.lt.u32.totalorder %s159_s10, %s231_s2 }
 0x11a   :  { %p165_p9 = pnand %p163_p8, %p160_p7 }
 0x11c   :  { %168 = shalt.err (!%p165_p9)
}
 0x11d   :  { %87 = dma.vmem_to_hbm [thread:$0]  %s85_s4, 128, %s231_s2, [#allocation5]  }
 0x11e   :  { %173 = dma.done.wait [#allocation5], 128  }
 0x11f   :  { %174 = vsyncadd [#allocation5], 4294967168 }
 0x120   :  { %91 = vsyncpa [#allocation4], 1 }
 0x121   :  { %92 = vsyncpa [#allocation7], 1 }
 0x122   :  { %93 = vsyncpa [#allocation5], 1 }

</bundles_post_ra>
